<compile_context>
chip_gen: v7x
topology: tpu7x:2x2x1
jax: 0.10.0
libtpu: 0.0.40
codegen_flags: <defaults>
</compile_context>

<pallas_src>
import jax
import jax.numpy as jnp
from jax.experimental import pallas as pl
from jax.experimental.pallas import tpu as pltpu

IN_FEATURES = 256
OUT_FEATURES = 7          # 1 (pres) + 3 (where_mu) + 3 (where_sd)
OUT_PAD = 128             # lane-dense padded matmul width (one MXU width)
OUT_STORE = 8             # lanes actually written back to HBM (>= 7, = out last dim)
DEFAULT_BLOCK_B = 2048    # batch tile; sweep 1024-4096 on real workloads


def latent_predictor_kernel(h_ref, w_ref, b_ref, out_ref):
    # h_ref:  (TB, 256)   VMEM (tile of the batch; f32 or bf16)
    # w_ref:  (256, 128)  VMEM (resident across grid; cols >= 7 are zeros)
    # b_ref:  (1, 128)    VMEM (resident across grid; f32)
    # out_ref:(TB, 8)     VMEM
    z = jnp.dot(h_ref[...], w_ref[...], preferred_element_type=jnp.float32)
    z = z + b_ref[...]                                  # (TB,128) f32

    # Narrow (1,128) column masks; broadcasting handles the row dimension.
    col = jax.lax.broadcasted_iota(jnp.int32, (1, OUT_PAD), 1)
    is_sigmoid = col == 0          # z_pres_proba
    is_identity = col < 4          # z_where_mu (cols 1..3)

    # Single transcendental e = exp(-|z|) reused by sigmoid & softplus.
    # Exact divide (not approx reciprocal): kernel is mem-bound, accuracy is free.
    e = jnp.exp(-jnp.abs(z))
    inv = 1.0 / (1.0 + e)
    sig = jnp.where(z >= 0.0, inv, e * inv)             # stable sigmoid
    softplus = jnp.maximum(z, 0.0) + jnp.log1p(e)       # stable softplus

    out = jnp.where(is_sigmoid, sig, jnp.where(is_identity, z, softplus))
    # Only the first 8 lanes are written back to HBM (masked vst; lanes live
    # within a single vreg tile, so no cross-tile relayout).
    out_ref[...] = out[:, :OUT_STORE].astype(out_ref.dtype)


def prepare_params(w, b, compute_dtype=jnp.bfloat16):
    """Pad PyTorch-layout params once (at parameter-load time, not per call).

    w: [7, 256]  ->  w_pad: [256, 128]  (transposed, zero cols beyond 6)
    b: [7]       ->  b_pad: [1, 128]    (f32, zero beyond 6)
    """
    w_pad = jnp.zeros((IN_FEATURES, OUT_PAD), compute_dtype)
    w_pad = w_pad.at[:, :OUT_FEATURES].set(w.T.astype(compute_dtype))
    b_pad = jnp.zeros((1, OUT_PAD), jnp.float32)
    b_pad = b_pad.at[0, :OUT_FEATURES].set(b.astype(jnp.float32))
    return w_pad, b_pad


def _round_up8(x):
    return ((x + 7) // 8) * 8


def _batch_tile(B, block_b):
    """Pick a batch tile: multiple of 8, and >= 2 grid steps when B > 8 so
    the 'parallel' grid axis spans both v7x TensorCores."""
    if B <= 8:
        return B                      # block == full dim is always legal
    half = _round_up8((B + 1) // 2)   # cap so the grid has >= 2 steps
    tb = min(block_b, half)
    tb = max(8, (tb // 8) * 8)        # floor to a multiple of 8
    return tb


def latent_predictor(h, w_pad, b_pad, *, block_b=DEFAULT_BLOCK_B,
                     out_dtype=jnp.float32):
    """h: [B, 256] (bf16 preferred — cast at the producing layer — or f32).
    w_pad/b_pad from prepare_params().  Returns (z_pres_proba, z_where_mu,
    z_where_sd) with shapes [B,1], [B,3], [B,3]."""
    B = h.shape[0]
    tb = _batch_tile(B, block_b)
    grid = (pl.cdiv(B, tb),)

    in_bytes = jnp.dtype(h.dtype).itemsize
    w_bytes = jnp.dtype(w_pad.dtype).itemsize
    out_bytes = jnp.dtype(out_dtype).itemsize
    cost = pl.CostEstimate(
        flops=2 * B * IN_FEATURES * OUT_PAD,
        transcendentals=2 * B * OUT_PAD,
        bytes_accessed=(B * IN_FEATURES * in_bytes        # read h (dominant)
                        + IN_FEATURES * OUT_PAD * w_bytes  # read w once
                        + OUT_PAD * 4                      # read bias
                        + B * OUT_STORE * out_bytes),      # narrow writeback
    )

    out = pl.pallas_call(
        latent_predictor_kernel,
        out_shape=jax.ShapeDtypeStruct((B, OUT_STORE), out_dtype),
        grid=grid,
        in_specs=[
            pl.BlockSpec((tb, IN_FEATURES), lambda i: (i, 0)),
            pl.BlockSpec((IN_FEATURES, OUT_PAD), lambda i: (0, 0)),  # resident
            pl.BlockSpec((1, OUT_PAD), lambda i: (0, 0)),            # resident
        ],
        out_specs=pl.BlockSpec((tb, OUT_STORE), lambda i: (i, 0)),
        compiler_params=pltpu.CompilerParams(
            dimension_semantics=("parallel",)),   # megacore-shardable on v7x
        cost_estimate=cost,
    )(h, w_pad, b_pad)

    z_pres_proba = out[:, 0:1]
    z_where_mu = out[:, 1:4]
    z_where_sd = out[:, 4:7]
    return z_pres_proba, z_where_mu, z_where_sd


def _reference(h, w, b):
    z = h.astype(jnp.float32) @ w.T.astype(jnp.float32) + b.astype(jnp.float32)
    return (jax.nn.sigmoid(z[:, 0:1]), z[:, 1:4], jax.nn.softplus(z[:, 4:7]))


def _check(got, ref, atol):
    for g, r in zip(got, ref):
        assert g.shape == r.shape, (g.shape, r.shape)
        assert jnp.allclose(g.astype(jnp.float32), r, atol=atol), (
            float(jnp.max(jnp.abs(g.astype(jnp.float32) - r))))


if __name__ == "__main__":
    key = jax.random.PRNGKey(0)
    k_h, k_w, k_b, k_h2 = jax.random.split(key, 4)

    B = 2
    h = jax.random.normal(k_h, (B, IN_FEATURES), jnp.float32)

    # Deterministic init mirroring nn.Linear default: U(-1/sqrt(256), 1/sqrt(256))
    bound = 1.0 / jnp.sqrt(jnp.float32(IN_FEATURES))
    w = jax.random.uniform(k_w, (OUT_FEATURES, IN_FEATURES), jnp.float32,
                           minval=-bound, maxval=bound)
    b = jax.random.uniform(k_b, (OUT_FEATURES,), jnp.float32,
                           minval=-bound, maxval=bound)

    ref = _reference(h, w, b)

    # 1) f32 h, f32 params, f32 output (exact sigmoid => tight tolerance).
    w_pad32, b_pad32 = prepare_params(w, b, jnp.float32)
    out_f32 = jax.block_until_ready(latent_predictor(h, w_pad32, b_pad32))
    _check(out_f32, ref, atol=2e-3)

    # 2) Primary perf path: bf16 h (in real use, cast at the producing layer)
    #    + bf16 weights (prepare_params default), f32 accumulation, f32 output.
    w_padbf, b_padbf = prepare_params(w, b)
    h_bf = h.astype(jnp.bfloat16)
    out_bf_in = jax.block_until_ready(latent_predictor(h_bf, w_padbf, b_padbf))
    _check(out_bf_in, ref, atol=2e-2)

    # 3) Optional bf16 output (further halves the already-narrow writeback).
    out_bf_out = jax.block_until_ready(
        latent_predictor(h_bf, w_padbf, b_padbf, out_dtype=jnp.bfloat16))
    _check(out_bf_out, ref, atol=3e-2)

    # 4) Exercise the batch-tiled path (grid > 1, incl. a partial last block).
    B2 = 22
    h2 = jax.random.normal(k_h2, (B2, IN_FEATURES), jnp.float32)
    ref2 = _reference(h2, w, b)
    out_tiled = jax.block_until_ready(
        latent_predictor(h2, w_pad32, b_pad32, block_b=8))
    _check(out_tiled, ref2, atol=2e-3)

    print("KERNEL_OK")
</pallas_src>

<mosaic_0001>
module attributes {stable_mosaic.version = 11 : i64} {
  func.func @latent_predictor_kernel(%arg0: i32, %arg1: memref<2x256xf32, #tpu.memory_space<vmem>>, %arg2: memref<256x128xf32, #tpu.memory_space<vmem>>, %arg3: memref<1x128xf32, #tpu.memory_space<vmem>>, %arg4: memref<2x8xf32, #tpu.memory_space<vmem>>) attributes {dimension_semantics = [#tpu.dimension_semantics<parallel>], iteration_bounds = array<i64: 1>, scalar_prefetch = 0 : i64, scratch_operands = 0 : i64, tpu.core_type = #tpu.core_type<tc>, window_params = [{transform_indices = @transform_0, window_bounds = array<i64: 2, 256>}, {pipeline_mode = #tpu.pipeline_mode<synchronous>, transform_indices = @transform_1, window_bounds = array<i64: 256, 128>}, {pipeline_mode = #tpu.pipeline_mode<synchronous>, transform_indices = @transform_2, window_bounds = array<i64: 1, 128>}, {transform_indices = @transform_3, window_bounds = array<i64: 2, 8>}]} {
    %c0 = arith.constant 0 : index
    %c0_0 = arith.constant 0 : index
    %0 = vector.load %arg1[%c0, %c0_0] : memref<2x256xf32, #tpu.memory_space<vmem>>, vector<2x256xf32>
    %c0_1 = arith.constant 0 : index
    %c0_2 = arith.constant 0 : index
    %1 = vector.load %arg2[%c0_1, %c0_2] : memref<256x128xf32, #tpu.memory_space<vmem>>, vector<256x128xf32>
    %cst = arith.constant dense<0.000000e+00> : vector<2x128xf32>
    %2 = tpu.matmul %0, %1, %cst {dimension_numbers = #tpu.dot_dimension_numbers<[1], [0], [0], [1], [0, 0, 1, 1], [], []>} : vector<2x256xf32>, vector<256x128xf32>, vector<2x128xf32> -> vector<2x128xf32>
    %c0_3 = arith.constant 0 : index
    %c0_4 = arith.constant 0 : index
    %3 = vector.load %arg3[%c0_3, %c0_4] : memref<1x128xf32, #tpu.memory_space<vmem>>, vector<1x128xf32>
    %4 = vector.broadcast %3 : vector<1x128xf32> to vector<2x128xf32>
    %5 = arith.addf %2, %4 : vector<2x128xf32>
    %6 = tpu.iota {dimensions = array<i32: 1>} : vector<1x128xi32>
    %c0_i32 = arith.constant 0 : i32
    %7 = vector.broadcast %c0_i32 : i32 to vector<1x128xi32>
    %8 = arith.cmpi eq, %6, %7 : vector<1x128xi32>
    %c4_i32 = arith.constant 4 : i32
    %9 = vector.broadcast %c4_i32 : i32 to vector<1x128xi32>
    %10 = arith.cmpi slt, %6, %9 : vector<1x128xi32>
    %11 = math.absf %5 : vector<2x128xf32>
    %cst_5 = arith.constant 0.000000e+00 : f32
    %12 = vector.broadcast %cst_5 : f32 to vector<2x128xf32>
    %13 = arith.subf %12, %11 : vector<2x128xf32>
    %14 = math.exp %13 : vector<2x128xf32>
    %cst_6 = arith.constant 1.000000e+00 : f32
    %15 = vector.broadcast %cst_6 : f32 to vector<2x128xf32>
    %16 = arith.addf %15, %14 : vector<2x128xf32>
    %cst_7 = arith.constant 1.000000e+00 : f32
    %17 = vector.broadcast %cst_7 : f32 to vector<2x128xf32>
    %18 = arith.divf %17, %16 : vector<2x128xf32>
    %cst_8 = arith.constant 0.000000e+00 : f32
    %19 = vector.broadcast %cst_8 : f32 to vector<2x128xf32>
    %20 = arith.cmpf oge, %5, %19 : vector<2x128xf32>
    %21 = arith.mulf %14, %18 : vector<2x128xf32>
    %22 = arith.select %20, %18, %21 : vector<2x128xi1>, vector<2x128xf32>
    %cst_9 = arith.constant 0.000000e+00 : f32
    %23 = vector.broadcast %cst_9 : f32 to vector<2x128xf32>
    %24 = arith.maximumf %5, %23 : vector<2x128xf32>
    %25 = math.log1p %14 : vector<2x128xf32>
    %26 = arith.addf %24, %25 : vector<2x128xf32>
    %27 = vector.shape_cast %10 : vector<1x128xi1> to vector<1x128xi1>
    %28 = vector.broadcast %27 : vector<1x128xi1> to vector<2x128xi1>
    %29 = arith.select %28, %5, %26 : vector<2x128xi1>, vector<2x128xf32>
    %30 = vector.shape_cast %8 : vector<1x128xi1> to vector<1x128xi1>
    %31 = vector.broadcast %30 : vector<1x128xi1> to vector<2x128xi1>
    %32 = arith.select %31, %22, %29 : vector<2x128xi1>, vector<2x128xf32>
    %33 = vector.extract_strided_slice %32 {offsets = [0, 0], sizes = [2, 8], strides = [1, 1]} : vector<2x128xf32> to vector<2x8xf32>
    %c0_10 = arith.constant 0 : index
    %c0_11 = arith.constant 0 : index
    %34 = vector.load %arg4[%c0_10, %c0_11] : memref<2x8xf32, #tpu.memory_space<vmem>>, vector<2x8xf32>
    tpu.vector_store %arg4[%c0_10, %c0_11], %33 {strides = array<i32>} : memref<2x8xf32, #tpu.memory_space<vmem>>, vector<2x8xf32>,
    return
  }
  func.func @transform_0(%arg0: i32) -> (i32, i32) {
    %c0_i32 = arith.constant 0 : i32
    %c0_i32_0 = arith.constant 0 : i32
    return %arg0, %c0_i32 : i32, i32
  }
  func.func @transform_1(%arg0: i32) -> (i32, i32) {
    %c0_i32 = arith.constant 0 : i32
    %c0_i32_0 = arith.constant 0 : i32
    %c0_i32_1 = arith.constant 0 : i32
    return %c0_i32, %c0_i32_0 : i32, i32
  }
  func.func @transform_2(%arg0: i32) -> (i32, i32) {
    %c0_i32 = arith.constant 0 : i32
    %c0_i32_0 = arith.constant 0 : i32
    %c0_i32_1 = arith.constant 0 : i32
    return %c0_i32, %c0_i32_0 : i32, i32
  }
  func.func @transform_3(%arg0: i32) -> (i32, i32) {
    %c0_i32 = arith.constant 0 : i32
    %c0_i32_0 = arith.constant 0 : i32
    return %arg0, %c0_i32 : i32, i32
  }
}

</mosaic_0001>

<bundles_post_ra>
// kernel: tpu_custom_call.1
= control target key start
LH: loop header
LB: loop body
LE: loop exit
PB: predicated region body
PF: predicated region fallthrough
CT: control target
= control target key end

     0   :  { %8 = vsyncpa [#allocation3], 0  ;;  %s434_s0 = inlined_call_operand.hbm [shape: f32[2,256], index: 0, kind: input, shape index: {}]   ;;  %s435_s1 = inlined_call_operand.hbm [shape: f32[256,128], index: 1, kind: input, shape index: {}]   ;;  %s436_s2 = inlined_call_operand.vmem [shape: f32[1,128], index: 2, kind: input, shape index: {}]   ;;  %s437_s3 = inlined_call_operand.hbm [shape: f32[2,8], index: 3, kind: output, shape index: {}]  }
   0x1   :  { %9 = vsyncpa [#allocation6], 0 }
   0x2   :  { %10 = vsyncpa [#allocation4], 0  ;;  %s363_s12 = smov [#allocation2]   ;;  %s364_s14 = smov [#allocation5]  }
   0x3   :  { %s17_s13 = sshll.u32 %s363_s12, 4  ;;  %s26_s15 = sshll.u32 %s364_s14, 4  ;;  %s18_s13 = int_to_ptr.vmem [resolvable:$true] %s17_s13  ;;  %s388_s15 = int_to_ptr.vmem [resolvable:$true] %s26_s15 }
   0x4   :  { %s291_s18 = scalar_lea.hbm %s434_s0, 64 }
   0x5   :  { %p292_p0 = scmp.ne.s32.totalorder %s434_s0, %s291_s18  ;;  %p295_p1 = scmp.lt.u32.totalorder %s291_s18, %s434_s0 }
   0x7   :  { %p297_p2 = pnand %p295_p1, %p292_p0 }
   0x9   :  { %300 = shalt.err (!%p297_p2)
}
   0xa   :  { %s301_s23 = scalar_lea.vmem %s18_s13, 64  ;;  %p306_p4 = scmp.lt.s32.totalorder %s18_s13, %s18_s13 }
   0xb   :  { %p302_p3 = scmp.ne.s32.totalorder %s18_s13, %s301_s23  ;;  %p307_p5 = scmp.lt.s32.totalorder %s301_s23, %s301_s23 }
   0xd   :  { %p308_p6 = por %p307_p5, %p306_p4 }
   0xf   :  { %p309_p7 = pnand %p308_p6, %p302_p3 }
  0x11   :  { %312 = shalt.err (!%p309_p7)
}
  0x12   :  { %20 = dma.hbm_to_vmem [thread:$0]  %s434_s0, 64, %s18_s13, [#allocation3]  }
  0x13   :  { %s313_s28 = scalar_lea.hbm %s435_s1, 4096 }
  0x14   :  { %p314_p8 = scmp.ne.s32.totalorder %s435_s1, %s313_s28  ;;  %p317_p9 = scmp.lt.u32.totalorder %s313_s28, %s435_s1 }
  0x16   :  { %p319_p10 = pnand %p317_p9, %p314_p8 }
  0x18   :  { %322 = shalt.err (!%p319_p10)
}
  0x19   :  { %s323_s6 = scalar_lea.vmem %s388_s15, 4096  ;;  %p328_p12 = scmp.lt.s32.totalorder %s388_s15, %s388_s15 }
  0x1a   :  { %p324_p11 = scmp.ne.s32.totalorder %s388_s15, %s323_s6  ;;  %p329_p13 = scmp.lt.s32.totalorder %s323_s6, %s323_s6 }
  0x1c   :  { %p330_p0 = por %p329_p13, %p328_p12 }
  0x1e   :  { %p331_p1 = pnand %p330_p0, %p324_p11 }
  0x20   :  { %334 = shalt.err (!%p331_p1)
}
  0x21   :  { %s365_s0 = smov 128   ;;  %s366_s7 = smov 8  }
  0x22   :  { %32 = dma.hbm_to_vmem [thread:$0]  %s435_s1, 4096, %s388_s15, [#allocation6], %s365_s0, %s365_s0, %s366_s7  }
  0x23   :  { %357 = dma.done.wait [#allocation3], 64  }
  0x24   :  { %358 = vsyncadd [#allocation3], 4294967232 }
  0x25   :  { %359 = dma.done.wait [#allocation6], 4096  }
  0x26   :  { %360 = vsyncadd [#allocation6], 4294963200  ;;  %v58_v0 = vld [vmem:[#allocation5 + $0x80] sm:$0xff]  ;;  %v59_v1 = vld [vmem:[#allocation5 + $0x88] sm:$0xff]  ;;  %v162_v61 = vlaneseq  ;;  %vm193_vm4 = vcmask 58368  }
  0x27   :  { %v42_v2 = vld [vmem:[#allocation5] sm:$0xff]  ;;  %v248_v3 = vpack.c.bf16 %v59_v1, %v58_v0  ;;  %v43_v4 = vld [vmem:[#allocation5 + $0x8] sm:$0xff]  ;;  %v60_v5 = vld [vmem:[#allocation5 + $0x90] sm:$0xff] }
  0x28   :  { %v61_v6 = vld [vmem:[#allocation5 + $0x98] sm:$0xff]  ;;  %v250_v7 = vpack.c.bf16 %v43_v4, %v42_v2  ;;  %v44_v9 = vld [vmem:[#allocation5 + $0x10] sm:$0xff]  ;;  %v62_v11 = vld [vmem:[#allocation5 + $0xa0] sm:$0xff]  ;;  %v163_v1 = vand.u32 127, %v162_v61 }
  0x29   :  { %v252_v8 = vpack.c.bf16 %v61_v6, %v60_v5  ;;  %v45_v10 = vld [vmem:[#allocation5 + $0x18] sm:$0xff]  ;;  %249 = vmatprep.subr.bf16.mxu0 %v248_v3  ;;  %v63_v12 = vld [vmem:[#allocation5 + $0xa8] sm:$0xff]  ;;  %v46_v15 = vld [vmem:[#allocation5 + $0x20] sm:$0xff] }
  0x2a   :  { %251 = vmatpush3.bf16.msra.mxu0 %v250_v7  ;;  %v254_v13 = vpack.c.bf16 %v45_v10, %v44_v9  ;;  %v256_v14 = vpack.c.bf16 %v63_v12, %v62_v11  ;;  %v47_v16 = vld [vmem:[#allocation5 + $0x28] sm:$0xff]  ;;  %v64_v17 = vld [vmem:[#allocation5 + $0xb0] sm:$0xff]  ;;  %v65_v18 = vld [vmem:[#allocation5 + $0xb8] sm:$0xff]  ;;  %vm165_vm1 = vcmp.lt.s32.totalorder %v163_v1, 4  ;;  %vm164_vm2 = vcmp.eq.s32.totalorder %v163_v1, 0 }
  0x2b   :  { %253 = vmatprep.subr.bf16.mxu0 %v252_v8  ;;  %v258_v19 = vpack.c.bf16 %v47_v16, %v46_v15  ;;  %v260_v20 = vpack.c.bf16 %v65_v18, %v64_v17  ;;  %v48_v21 = vld [vmem:[#allocation5 + $0x30] sm:$0xff]  ;;  %v49_v22 = vld [vmem:[#allocation5 + $0x38] sm:$0xff]  ;;  %v66_v23 = vld [vmem:[#allocation5 + $0xc0] sm:$0xff] }
  0x2c   :  { %v67_v24 = vld [vmem:[#allocation5 + $0xc8] sm:$0xff]  ;;  %v212_v25 = vld.sshfl [vmem:[#allocation2] sm:$0x33 pattern:$0x76325410]  ;;  %v262_v27 = vpack.c.bf16 %v49_v22, %v48_v21  ;;  %v50_v29 = vld [vmem:[#allocation5 + $0x40] sm:$0xff] }
  0x2d   :  { %v89_v26 = vcombine.high %v212_v25, %v212_v25  ;;  %v264_v28 = vpack.c.bf16 %v67_v24, %v66_v23  ;;  %v51_v30 = vld [vmem:[#allocation5 + $0x48] sm:$0xff]  ;;  %v68_v31 = vld [vmem:[#allocation5 + $0xd0] sm:$0xff]  ;;  %v69_v32 = vld [vmem:[#allocation5 + $0xd8] sm:$0xff] }
  0x2e   :  { %255 = vmatpush3.bf16.msra.mxu0 %v254_v13  ;;  %v266_v33 = vpack.c.bf16 %v51_v30, %v50_v29  ;;  %v268_v34 = vpack.c.bf16 %v69_v32, %v68_v31  ;;  %v52_v35 = vld [vmem:[#allocation5 + $0x50] sm:$0xff]  ;;  %v53_v36 = vld [vmem:[#allocation5 + $0x58] sm:$0xff]  ;;  %v70_v37 = vld [vmem:[#allocation5 + $0xe0] sm:$0xff] }
  0x2f   :  { %257 = vmatprep.subr.bf16.mxu0 %v256_v14  ;;  %156 = vmatprep.mubr.f32.mxu0 %v89_v26  ;;  %v71_v38 = vld [vmem:[#allocation5 + $0xe8] sm:$0xff]  ;;  %v270_v39 = vpack.c.bf16 %v53_v36, %v52_v35  ;;  %v54_v41 = vld [vmem:[#allocation5 + $0x60] sm:$0xff]  ;;  %v72_v43 = vld [vmem:[#allocation5 + $0xf0] sm:$0xff] }
  0x30   :  { %v272_v40 = vpack.c.bf16 %v71_v38, %v70_v37  ;;  %v55_v42 = vld [vmem:[#allocation5 + $0x68] sm:$0xff]  ;;  %v73_v44 = vld [vmem:[#allocation5 + $0xf8] sm:$0xff]  ;;  %v56_v47 = vld [vmem:[#allocation5 + $0x70] sm:$0xff] }
  0x31   :  { %v274_v45 = vpack.c.bf16 %v55_v42, %v54_v41  ;;  %v276_v46 = vpack.c.bf16 %v73_v44, %v72_v43  ;;  %v57_v48 = vld [vmem:[#allocation5 + $0x78] sm:$0xff] }
  0x32   :  { %259 = vmatpush3.bf16.msra.mxu0 %v258_v19  ;;  %v278_v49 = vpack.c.bf16 %v57_v48, %v56_v47  ;;  %v211_v51 = vld [vmem:[%s436_s2] ss:$0 sm:$0xff]  ;;  %s367_s2 = smov [#allocation7]  }
  0x33   :  { %261 = vmatprep.subr.bf16.mxu0 %v260_v20  ;;  %s201_s11 = sshll.u32 %s367_s2, 4  ;;  %s202_s11 = int_to_ptr.vmem [resolvable:$true] %s201_s11 }
  0x34   :  { %s335_s12 = scalar_lea.vmem %s202_s11, 32  ;;  %p340_p3 = scmp.lt.s32.totalorder %s202_s11, %s202_s11 }
  0x35   :  { %p336_p2 = scmp.ne.s32.totalorder %s202_s11, %s335_s12  ;;  %p341_p4 = scmp.lt.s32.totalorder %s335_s12, %s335_s12 }
  0x36   :  { %263 = vmatpush3.bf16.msra.mxu0 %v262_v27 }
  0x37   :  { %265 = vmatprep.subr.bf16.mxu0 %v264_v28  ;;  %p342_p5 = por %p341_p4, %p340_p3 }
  0x39   :  { %p343_p6 = pnand %p342_p5, %p336_p2 }
  0x3a   :  { %267 = vmatpush3.bf16.msra.mxu0 %v266_v33 }
  0x3b   :  { %269 = vmatprep.subr.bf16.mxu0 %v268_v34 }
  0x3e   :  { %271 = vmatpush3.bf16.msra.mxu0 %v270_v39 }
  0x3f   :  { %273 = vmatprep.subr.bf16.mxu0 %v272_v40 }
  0x42   :  { %275 = vmatpush3.bf16.msra.mxu0 %v274_v45 }
  0x43   :  { %277 = vmatprep.subr.bf16.mxu0 %v276_v46 }
  0x46   :  { %279 = vmatpush3.bf16.msra.mxu0 %v278_v49 }
  0x49   :  { %157 = vmatmul.mubr.f32.vlgmr.msra.gmra.mrb[0].mxu0 %v212_v25 }
 0x11c   :  { %v245_v50 = vpop.f32.mrb[0].mxu0 }
 0x11d   :  { %v246_v52 = vpop.f32.mrb[1].mxu0 }
 0x11e   :  { %v247_v53 = vadd.f32 %v246_v52, %v245_v50 }
 0x120   :  { %v159_v54 = vadd.f32 %v247_v53, %v211_v51 }
 0x122   :  { %v166_v55 = vand.u32 2147483647, %v159_v54  ;;  %v176_v5 = vmax.f32 %v159_v54, 0.0  ;;  %vm173_vm3 = vcmp.ge.f32.partialorder %v159_v54, 0.0 }
 0x124   :  { %v167_v56 = vsub.f32 0.0, %v166_v55 }
 0x126   :  { %v168_v57 = vmul.f32 1.442695, %v167_v56 }
 0x128   :  { %285 = vpow2.f32 %v168_v57 }
 0x132   :  { %v286_v58 = vpop.eup %285 }
 0x133   :  { %v170_v59 = vadd.f32 1.0, %v286_v58  ;;  %v180_v60 = vmul.f32 -0.5, %v286_v58  ;;  %v183_v63 = vand.u32 2147483647, %v286_v58 }
 0x135   :  { %287 = vrcp.f32 %v170_v59  ;;  %v181_v62 = vadd.f32 1.0, %v180_v60  ;;  %vm184_vm0 = vcmp.lt.f32.partialorder %v183_v63, 0.0004427343 }
 0x136   :  { %289 = vlog2.f32 %v170_v59 }
 0x137   :  { %v182_v4 = vmul.f32 %v286_v58, %v181_v62 }
 0x13f   :  { %v288_v0 = vpop.eup %287 }
 0x140   :  { %v290_v2 = vpop.eup %289  ;;  %v174_v6 = vmul.f32 %v288_v0, %v286_v58 }
 0x141   :  { %v179_v3 = vmul.f32 0.6931472, %v290_v2 }
 0x142   :  { %v175_v9 = vsel %vm173_vm3, %v288_v0, %v174_v6 }
 0x143   :  { %v185_v7 = vsel %vm184_vm0, %v182_v4, %v179_v3 }
 0x144   :  { %v186_v8 = vadd.f32 %v185_v7, %v176_v5 }
 0x146   :  { %v189_v10 = vsel %vm165_vm1, %v159_v54, %v186_v8 }
 0x147   :  { %v192_v11 = vsel %vm164_vm2, %v175_v9, %v189_v10 }
 0x148   :  { %194 = vst.msk [vmem:[#allocation7] sm:$0x3] %vm193_vm4, %v192_v11 }
 0x149   :  { %346 = shalt.err (!%p343_p6)
}
 0x14a   :  { %s347_s15 = scalar_lea.hbm %s437_s3, 32 }
 0x14b   :  { %p348_p7 = scmp.ne.s32.totalorder %s437_s3, %s347_s15  ;;  %p351_p8 = scmp.lt.u32.totalorder %s347_s15, %s437_s3 }
 0x14d   :  { %p353_p9 = pnand %p351_p8, %p348_p7 }
 0x14f   :  { %356 = shalt.err (!%p353_p9)
}
 0x150   :  { %204 = dma.vmem_to_hbm [thread:$0]  %s202_s11, 32, %s437_s3, [#allocation4]  }
 0x151   :  { %361 = dma.done.wait [#allocation4], 32  }
 0x152   :  { %362 = vsyncadd [#allocation4], 4294967264 }
 0x153   :  { %208 = vsyncpa [#allocation3], 1 }
 0x154   :  { %209 = vsyncpa [#allocation6], 1 }
 0x155   :  { %210 = vsyncpa [#allocation4], 1 }

</bundles_post_ra>
